<compile_context>
chip_gen: v5e
topology: v5e:2x2
jax: 0.10.0
libtpu: 0.0.40
codegen_flags: <defaults>
</compile_context>

<pallas_src>
import math

import jax
import jax.numpy as jnp
from jax.experimental import pallas as pl
from jax.experimental.pallas import tpu as pltpu


def _round_up(x, m):
    return ((x + m - 1) // m) * m


def _timestep_embedder_kernel(t_ref, f_ref, w1_ref, b1_ref, w2_ref, b2_ref,
                              o_ref):
    """One batch tile of the fused TimestepEmbedder forward.

    t_ref : (TB, 1)    f32   timesteps
    f_ref : (1, half)  f32   sinusoid frequencies (trace-time constant)
    w1_ref: (F, H)     bf16  first Linear weight (already transposed)
    b1_ref: (1, H)     f32
    w2_ref: (H, H)     bf16  second Linear weight (already transposed)
    b2_ref: (1, H)     f32
    o_ref : (TB, H)
    """
    # Sinusoidal features in f32 on the VPU (broadcast (TB,1)*(1,half)).
    args = t_ref[...] * f_ref[...]                                  # (TB, half)
    # cos || sin in a single (TB, F) value: half is a lane multiple of 128, so
    # both halves are lane-aligned and the first Linear is a single K=F dot.
    emb = jnp.concatenate([jnp.cos(args), jnp.sin(args)], axis=-1)  # (TB, F)

    # First Linear: bf16 operands, f32 accumulate (single-pass MXU).
    h = jnp.dot(emb.astype(w1_ref.dtype), w1_ref[...],
                preferred_element_type=jnp.float32)
    h = h + b1_ref[...]

    # SiLU: x * sigmoid(x) = x * 1/(1 + exp(-x)).  exp and the approximate
    # reciprocal both run on the EUP; reciprocal(+inf) -> 0 keeps large
    # negative pre-activations finite (silu -> 0).
    h = h * pl.reciprocal(1.0 + jnp.exp(-h), approx=True)

    # Second Linear.
    out = jnp.dot(h.astype(w2_ref.dtype), w2_ref[...],
                  preferred_element_type=jnp.float32) + b2_ref[...]
    o_ref[...] = out.astype(o_ref.dtype)


def timestep_embedder_forward(t, w1, b1, w2, b2, *,
                              frequency_embedding_size=256,
                              max_period=10000.0,
                              tile_b=2048,
                              min_tile_b=256,
                              out_dtype=jnp.float32):
    """TimestepEmbedder.forward.

    t : (B,) float timesteps (may be fractional)
    w1: (F, H)  first Linear weight, transposed so that  h  = emb @ w1 + b1
    b1: (H,)
    w2: (H, H)  second Linear weight, transposed so that out = h @ w2 + b2
    b2: (H,)
    returns (B, H) in out_dtype (f32 default; pass bf16 if the consumer is bf16)
    """
    assert t.ndim == 1
    f_dim = frequency_embedding_size
    # TODO(synk): odd frequency_embedding_size (extra zero column) not handled;
    # the module default (256) is even.
    assert f_dim % 2 == 0, "frequency_embedding_size must be even"
    half = f_dim // 2
    assert w1.shape[0] == f_dim
    hidden = w1.shape[1]
    b = t.shape[0]

    # --- trace-time constants / layout prep (hoisted out of the kernel) ---
    freqs = jnp.exp(
        -math.log(max_period) * jnp.arange(half, dtype=jnp.float32) / half
    ).reshape(1, half)
    t2d = t.reshape(b, 1).astype(jnp.float32)
    # bf16 matmul operands: single-pass MXU + half the weight DMA/VMEM bytes.
    w1_bf = w1.astype(jnp.bfloat16)
    w2_bf = w2.astype(jnp.bfloat16)
    b1_2d = b1.reshape(1, hidden).astype(jnp.float32)
    b2_2d = b2.reshape(1, hidden).astype(jnp.float32)

    kernel_args = (t2d, freqs, w1_bf, b1_2d, w2_bf, b2_2d)
    out_shape = jax.ShapeDtypeStruct((b, hidden), out_dtype)

    if b < 2 * min_tile_b:
        # Small batch: gridless single-block call — whole problem fits VMEM,
        # no per-grid-step pipeline bookkeeping.
        vmem = pltpu.MemorySpace.VMEM
        return pl.pallas_call(
            _timestep_embedder_kernel,
            out_shape=out_shape,
            in_specs=[pl.BlockSpec(memory_space=vmem)] * len(kernel_args),
            out_specs=pl.BlockSpec(memory_space=vmem),
        )(*kernel_args)

    # Medium/large batch: batch-tiled grid with a "parallel" axis.  At least
    # two grid steps so both v7x TensorCores get work; fat tiles (<= tile_b,
    # default 2048) amortize the ~0.35 us per-step pipeline cost and stay well
    # under scoped VMEM on v5e/v6e/v7x.
    tb = min(tile_b, _round_up(pl.cdiv(b, 2), 8))
    grid = (pl.cdiv(b, tb),)
    # NOTE: the constant-index inputs (freqs/w1/b1/w2/b2) could be
    # single-buffered (pipeline_mode=pl.Buffered(1)); left default-buffered
    # since the VMEM saving is tiny at these sizes.
    return pl.pallas_call(
        _timestep_embedder_kernel,
        out_shape=out_shape,
        grid=grid,
        in_specs=[
            pl.BlockSpec((tb, 1), lambda i: (i, 0)),
            pl.BlockSpec((1, half), lambda i: (0, 0)),
            pl.BlockSpec((f_dim, hidden), lambda i: (0, 0)),
            pl.BlockSpec((1, hidden), lambda i: (0, 0)),
            pl.BlockSpec((hidden, hidden), lambda i: (0, 0)),
            pl.BlockSpec((1, hidden), lambda i: (0, 0)),
        ],
        out_specs=pl.BlockSpec((tb, hidden), lambda i: (i, 0)),
        compiler_params=pltpu.CompilerParams(
            dimension_semantics=("parallel",)),
    )(*kernel_args)


def _reference(t, w1, b1, w2, b2, frequency_embedding_size=256,
               max_period=10000.0):
    # Pure-JAX mirror of the PyTorch forward (cos first, then sin), all f32.
    half = frequency_embedding_size // 2
    freqs = jnp.exp(
        -math.log(max_period) * jnp.arange(half, dtype=jnp.float32) / half)
    args = t[:, None].astype(jnp.float32) * freqs[None, :]
    emb = jnp.concatenate([jnp.cos(args), jnp.sin(args)], axis=-1)
    h = emb @ w1 + b1
    h = h * jax.nn.sigmoid(h)
    return h @ w2 + b2


if __name__ == "__main__":
    frequency_embedding_size = 256   # module default
    hidden_size = 128                # lane-aligned hidden width
    batch_small = 8                  # exercises the gridless path
    batch_large = 600                # exercises the batch-tiled grid path
                                     # (2 grid steps, ragged last tile)

    key = jax.random.PRNGKey(0)
    k_ts, k_tl, k_w1, k_b1, k_w2, k_b2 = jax.random.split(key, 6)

    # Deterministic "parameters" (roughly Linear-init scaled) and example input.
    w1 = jax.random.normal(k_w1, (frequency_embedding_size, hidden_size),
                           dtype=jnp.float32) / math.sqrt(frequency_embedding_size)
    b1 = jax.random.normal(k_b1, (hidden_size,), dtype=jnp.float32) * 0.01
    w2 = jax.random.normal(k_w2, (hidden_size, hidden_size),
                           dtype=jnp.float32) / math.sqrt(hidden_size)
    b2 = jax.random.normal(k_b2, (hidden_size,), dtype=jnp.float32) * 0.01
    t_small = jax.random.uniform(k_ts, (batch_small,), dtype=jnp.float32) * 100.0
    t_large = jax.random.uniform(k_tl, (batch_large,), dtype=jnp.float32) * 100.0

    # Tolerance accommodates bf16 MXU operands (f32 accumulate) and the
    # approximate EUP reciprocal in SiLU.
    atol = rtol = 3e-2

    # --- small batch: gridless path ---
    out_s = timestep_embedder_forward(
        t_small, w1, b1, w2, b2,
        frequency_embedding_size=frequency_embedding_size)
    out_s = jax.block_until_ready(out_s)
    ref_s = _reference(t_small, w1, b1, w2, b2, frequency_embedding_size)
    assert out_s.shape == (batch_small, hidden_size), out_s.shape
    assert jnp.allclose(out_s, ref_s, atol=atol, rtol=rtol), "small-batch mismatch"

    # --- larger batch: batch-tiled "parallel" grid path (ragged last tile) ---
    out_l = timestep_embedder_forward(
        t_large, w1, b1, w2, b2,
        frequency_embedding_size=frequency_embedding_size)
    out_l = jax.block_until_ready(out_l)
    ref_l = _reference(t_large, w1, b1, w2, b2, frequency_embedding_size)
    assert out_l.shape == (batch_large, hidden_size), out_l.shape
    assert jnp.allclose(out_l, ref_l, atol=atol, rtol=rtol), "large-batch mismatch"

    print("KERNEL_OK")
</pallas_src>

<mosaic_0001>
module attributes {stable_mosaic.version = 11 : i64} {
  func.func @_timestep_embedder_kernel(%arg0: memref<8x1xf32, #tpu.memory_space<vmem>>, %arg1: memref<1x128xf32, #tpu.memory_space<vmem>>, %arg2: memref<256x128xbf16, #tpu.memory_space<vmem>>, %arg3: memref<1x128xf32, #tpu.memory_space<vmem>>, %arg4: memref<128x128xbf16, #tpu.memory_space<vmem>>, %arg5: memref<1x128xf32, #tpu.memory_space<vmem>>, %arg6: memref<8x128xf32, #tpu.memory_space<vmem>>) attributes {dimension_semantics = [], scalar_prefetch = 0 : i64, scratch_operands = 0 : i64, tpu.core_type = #tpu.core_type<tc>} {
    %c0 = arith.constant 0 : index
    %c0_0 = arith.constant 0 : index
    %0 = vector.load %arg0[%c0, %c0_0] : memref<8x1xf32, #tpu.memory_space<vmem>>, vector<8x1xf32>
    %c0_1 = arith.constant 0 : index
    %c0_2 = arith.constant 0 : index
    %1 = vector.load %arg1[%c0_1, %c0_2] : memref<1x128xf32, #tpu.memory_space<vmem>>, vector<1x128xf32>
    %2 = vector.broadcast %0 : vector<8x1xf32> to vector<8x128xf32>
    %3 = vector.broadcast %1 : vector<1x128xf32> to vector<8x128xf32>
    %4 = arith.mulf %2, %3 : vector<8x128xf32>
    %5 = math.cos %4 : vector<8x128xf32>
    %6 = math.sin %4 : vector<8x128xf32>
    %7 = tpu.concatenate %5, %6 in 1 : vector<8x128xf32>, vector<8x128xf32> -> vector<8x256xf32>
    %8 = arith.truncf %7 : vector<8x256xf32> to vector<8x256xbf16>
    %c0_3 = arith.constant 0 : index
    %c0_4 = arith.constant 0 : index
    %9 = vector.load %arg2[%c0_3, %c0_4] : memref<256x128xbf16, #tpu.memory_space<vmem>>, vector<256x128xbf16>
    %cst = arith.constant dense<0.000000e+00> : vector<8x128xf32>
    %10 = tpu.matmul %8, %9, %cst {dimension_numbers = #tpu.dot_dimension_numbers<[1], [0], [0], [1], [0, 0, 1, 1], [], []>} : vector<8x256xbf16>, vector<256x128xbf16>, vector<8x128xf32> -> vector<8x128xf32>
    %c0_5 = arith.constant 0 : index
    %c0_6 = arith.constant 0 : index
    %11 = vector.load %arg3[%c0_5, %c0_6] : memref<1x128xf32, #tpu.memory_space<vmem>>, vector<1x128xf32>
    %12 = vector.broadcast %11 : vector<1x128xf32> to vector<8x128xf32>
    %13 = arith.addf %10, %12 : vector<8x128xf32>
    %cst_7 = arith.constant 0.000000e+00 : f32
    %14 = vector.broadcast %cst_7 : f32 to vector<8x128xf32>
    %15 = arith.subf %14, %13 : vector<8x128xf32>
    %16 = math.exp %15 : vector<8x128xf32>
    %cst_8 = arith.constant 1.000000e+00 : f32
    %17 = vector.broadcast %cst_8 : f32 to vector<8x128xf32>
    %18 = arith.addf %17, %16 : vector<8x128xf32>
    %19 = tpu.reciprocal %18 {approx = true} : vector<8x128xf32> -> vector<8x128xf32>
    %20 = arith.mulf %13, %19 : vector<8x128xf32>
    %21 = arith.truncf %20 : vector<8x128xf32> to vector<8x128xbf16>
    %c0_9 = arith.constant 0 : index
    %c0_10 = arith.constant 0 : index
    %22 = vector.load %arg4[%c0_9, %c0_10] : memref<128x128xbf16, #tpu.memory_space<vmem>>, vector<128x128xbf16>
    %cst_11 = arith.constant dense<0.000000e+00> : vector<8x128xf32>
    %23 = tpu.matmul %21, %22, %cst_11 {dimension_numbers = #tpu.dot_dimension_numbers<[1], [0], [0], [1], [0, 0, 1, 1], [], []>} : vector<8x128xbf16>, vector<128x128xbf16>, vector<8x128xf32> -> vector<8x128xf32>
    %c0_12 = arith.constant 0 : index
    %c0_13 = arith.constant 0 : index
    %24 = vector.load %arg5[%c0_12, %c0_13] : memref<1x128xf32, #tpu.memory_space<vmem>>, vector<1x128xf32>
    %25 = vector.broadcast %24 : vector<1x128xf32> to vector<8x128xf32>
    %26 = arith.addf %23, %25 : vector<8x128xf32>
    %c0_14 = arith.constant 0 : index
    %c0_15 = arith.constant 0 : index
    %27 = vector.load %arg6[%c0_14, %c0_15] : memref<8x128xf32, #tpu.memory_space<vmem>>, vector<8x128xf32>
    tpu.vector_store %arg6[%c0_14, %c0_15], %26 {strides = array<i32>} : memref<8x128xf32, #tpu.memory_space<vmem>>, vector<8x128xf32>,
    return
  }
}

</mosaic_0001>

<bundles_post_ra>
// kernel: tpu_custom_call.1
= control target key start
LH: loop header
LB: loop body
LE: loop exit
PB: predicated region body
PF: predicated region fallthrough
CT: control target
= control target key end

     0   :  { %11 = vsyncpa [#allocation3], 0  ;;  %s996_s0 = inlined_call_operand.vmem [shape: f32[8,1], index: 0, kind: input, shape index: {}]   ;;  %s997_s1 = inlined_call_operand.vmem [shape: f32[1,128], index: 1, kind: input, shape index: {}]   ;;  %s998_s2 = inlined_call_operand.hbm [shape: bf16[256,128], index: 2, kind: input, shape index: {}]   ;;  %s999_s3 = inlined_call_operand.vmem [shape: f32[1,128], index: 3, kind: input, shape index: {}]   ;;  %s1000_s4 = inlined_call_operand.hbm [shape: bf16[128,128], index: 4, kind: input, shape index: {}]   ;;  %s1001_s5 = inlined_call_operand.vmem [shape: f32[1,128], index: 5, kind: input, shape index: {}]   ;;  %s1002_s6 = inlined_call_operand.hbm [shape: f32[8,128], index: 6, kind: output, shape index: {}]  }
   0x1   :  { %12 = vsyncpa [#allocation6], 0 }
   0x2   :  { %13 = vsyncpa [#allocation4], 0  ;;  %s22_s23 = sshll.u32 %s998_s2, 4  ;;  %s867_s24 = smov [#allocation2]   ;;  %s23_s23 = int_to_ptr.hbm [resolvable:$true] %s22_s23 }
   0x3   :  { %s24_s25 = sshll.u32 %s867_s24, 4  ;;  %s37_s28 = sshll.u32 %s1000_s4, 4  ;;  %s25_s25 = int_to_ptr.vmem [resolvable:$true] %s24_s25  ;;  %s38_s28 = int_to_ptr.hbm [resolvable:$true] %s37_s28 }
   0x4   :  { %s868_s29 = smov 64   ;;  %s869_s30 = smov 4  }
   0x5   :  { %30 = dma.hbm_to_vmem [thread:$0]  %s23_s23, 2048, %s25_s25, [#allocation3], %s868_s29, %s868_s29, %s869_s30  }
   0x6   :  { %s870_s7 = smov [#allocation5]  }
   0x7   :  { %s39_s8 = sshll.u32 %s870_s7, 4  ;;  %s40_s8 = int_to_ptr.vmem [resolvable:$true] %s39_s8 }
   0x8   :  { %45 = dma.hbm_to_vmem [thread:$0]  %s38_s28, 1024, %s40_s8, [#allocation6], %s868_s29, %s868_s29, %s869_s30  }
   0x9   :  { %861 = dma.done.wait [#allocation3], 2048  }
   0xa   :  { %862 = vsyncadd [#allocation3], 4294965248 }
   0xb   :  { %863 = dma.done.wait [#allocation6], 1024  }
   0xc   :  { %864 = vsyncadd [#allocation6], 4294966272  ;;  %v871_v0 = vmov 0   ;;  %v56_v1 = vld [vmem:[%s996_s0] sm:$0xff]  ;;  %v752_v2 = vld [vmem:[#allocation2 + $0x38] sm:$0xff]  ;;  %s632_s16 = sshll.u32 %s1002_s6, 4  ;;  %s633_s16 = int_to_ptr.hbm [resolvable:$true] %s632_s16 }
   0xd   :  { %781 = vset.pattern.permute.xlu0 %v871_v0  ;;  %v760_v3 = vld [vmem:[#allocation2 + $0x78] sm:$0xff]  ;;  %510 = vmatpush.bf16.msra.mxu0 %v752_v2  ;;  %v751_v4 = vld [vmem:[#allocation2 + $0x30] sm:$0xff]  ;;  %v782_v6 = vld [vmem:[%s997_s1] ss:$0 sm:$0xff]  ;;  %v872_v30 = vmov 683565275  }
   0xe   :  { %60 = vperm.xlu0 %781, %v56_v1   ;;  %523 = vmatpush.bf16.msra.mxu1 %v760_v3  ;;  %v759_v5 = vld [vmem:[#allocation2 + $0x70] sm:$0xff]  ;;  %v750_v7 = vld [vmem:[#allocation2 + $0x28] sm:$0xff]  ;;  %v749_v11 = vld [vmem:[#allocation2 + $0x20] sm:$0xff]  ;;  %v873_v32 = vmov 2475754826  }
   0xf   :  { %v758_v8 = vld [vmem:[#allocation2 + $0x68] sm:$0xff]  ;;  %v757_v12 = vld [vmem:[#allocation2 + $0x60] sm:$0xff]  ;;  %v748_v15 = vld [vmem:[#allocation2 + $0x18] sm:$0xff]  ;;  %v874_v34 = vmov 2131351028  }
  0x10   :  { %v756_v16 = vld [vmem:[#allocation2 + $0x58] sm:$0xff]  ;;  %v747_v20 = vld [vmem:[#allocation2 + $0x10] sm:$0xff]  ;;  %v746_v25 = vld [vmem:[#allocation2 + $0x8] sm:$0xff]  ;;  %v875_v36 = vmov 2102212464  }
  0x11   :  { %511 = vmatpush.bf16.msra.mxu0 %v751_v4  ;;  %v755_v21 = vld [vmem:[#allocation2 + $0x50] sm:$0xff]  ;;  %v754_v27 = vld [vmem:[#allocation2 + $0x48] sm:$0xff]  ;;  %v876_v41 = vmov 920167782   ;;  %v745_v43 = vld [vmem:[#allocation2] sm:$0xff] }
  0x12   :  { %524 = vmatpush.bf16.msra.mxu1 %v759_v5  ;;  %v877_v45 = vmov 1326507024   ;;  %v753_v48 = vld [vmem:[#allocation2 + $0x40] sm:$0xff] }
  0x15   :  { %512 = vmatpush.bf16.msra.mxu0 %v750_v7 }
  0x16   :  { %525 = vmatpush.bf16.msra.mxu1 %v758_v8 }
  0x19   :  { %513 = vmatpush.bf16.msra.mxu0 %v749_v11 }
  0x1a   :  { %526 = vmatpush.bf16.msra.mxu1 %v757_v12 }
  0x1d   :  { %514 = vmatpush.bf16.msra.mxu0 %v748_v15 }
  0x1e   :  { %527 = vmatpush.bf16.msra.mxu1 %v756_v16 }
  0x21   :  { %515 = vmatpush.bf16.msra.mxu0 %v747_v20 }
  0x22   :  { %528 = vmatpush.bf16.msra.mxu1 %v755_v21 }
  0x25   :  { %516 = vmatpush.bf16.msra.mxu0 %v746_v25 }
  0x26   :  { %529 = vmatpush.bf16.msra.mxu1 %v754_v27 }
  0x29   :  { %517 = vmatpush.bf16.msra.mxu0 %v745_v43 }
  0x2a   :  { %530 = vmatpush.bf16.msra.mxu1 %v753_v48 }
  0x80   :  { %v61_v9 = vpop.permute.xlu0 %60 }
  0x81   :  { %v927_v10 = vmul.f32 %v782_v6, %v61_v9 }
  0x83   :  { %v70_v13 = vand.u32 2139095040, %v927_v10  ;;  %v67_v17 = vand.u32 2147483647, %v927_v10  ;;  %vm69_vm12 = vcmp.lt.s32.totalorder %v927_v10, 0 }
  0x85   :  { %v71_v14 = vshrl.u32 %v70_v13, 23  ;;  %v74_v22 = vand.u32 8388607, %v67_v17  ;;  %vm68_vm13 = vcmp.le.f32.partialorder %v67_v17, 0.7853982 }
  0x87   :  { %v643_v18 = vadd.s32 4294967169, %v71_v14  ;;  %v75_v26 = vor.u32 8388608, %v74_v22 }
  0x89   :  { %v77_v19 = vadd.s32 1, %v643_v18  ;;  %v943_v47 = vshll.u32 %v75_v26, 8 }
  0x8b   :  { %vm78_vm0 = vcmp.gt.s32.totalorder %v77_v19, 0  ;;  %v116_v60 = vand.u32 65535, %v943_v47  ;;  %v117_v62 = vshrl.u32 %v943_v47, 16 }
  0x8c   :  { %v79_v23 = vsel %vm78_vm0, %v77_v19, 0 }
  0x8d   :  { %v81_v24 = vand.u32 31, %v79_v23  ;;  %v933_v28 = vshrl.u32 %v79_v23, 5 }
  0x8f   :  { %v935_v29 = vsub.s32 32, %v81_v24  ;;  %v84_v31 = vshll.u32 %v872_v30, %v81_v24  ;;  %v87_v33 = vshll.u32 %v873_v32, %v81_v24  ;;  %v90_v35 = vshll.u32 %v874_v34, %v81_v24 }
  0x90   :  { %v93_v37 = vshll.u32 %v875_v36, %v81_v24  ;;  %v96_v44 = vshll.u32 %v876_v41, %v81_v24  ;;  %vm99_vm1 = vcmp.lt.s32.totalorder %v933_v28, 1  ;;  %vm102_vm2 = vcmp.lt.s32.totalorder %v933_v28, 4 }
  0x91   :  { %v85_v38 = vshrl.u32 %v873_v32, %v935_v29  ;;  %v88_v39 = vshrl.u32 %v874_v34, %v935_v29  ;;  %v91_v40 = vshrl.u32 %v875_v36, %v935_v29  ;;  %v94_v42 = vshrl.u32 %v876_v41, %v935_v29 }
  0x92   :  { %v97_v46 = vshrl.u32 %v877_v45, %v935_v29  ;;  %vm101_vm3 = vcmp.lt.s32.totalorder %v933_v28, 3  ;;  %vm100_vm4 = vcmp.lt.s32.totalorder %v933_v28, 2  ;;  %v83_v25 = vshrl.u32 %v872_v30, %v935_v29 }
  0x93   :  { %v86_v49 = vor.u32 %v85_v38, %v84_v31  ;;  %v89_v50 = vor.u32 %v88_v39, %v87_v33  ;;  %v92_v51 = vor.u32 %v91_v40, %v90_v35  ;;  %v95_v52 = vor.u32 %v94_v42, %v93_v37 }
  0x94   :  { %v98_v53 = vor.u32 %v97_v46, %v96_v44 }
  0x95   :  { %v107_v54 = vsel %vm99_vm1, %v86_v49, %v89_v50  ;;  %v108_v55 = vsel %vm102_vm2, %v95_v52, 920167782  ;;  %v111_v56 = vsel %vm99_vm1, %v89_v50, %v92_v51  ;;  %v104_v22 = vsel %vm102_vm2, %v92_v51, 2102212464 }
  0x96   :  { %v109_v57 = vsel %vm101_vm3, %v92_v51, %v108_v55  ;;  %v112_v58 = vsel %vm102_vm2, %v98_v53, 1326507024  ;;  %v103_v34 = vsel %vm99_vm1, %v83_v25, %v86_v49  ;;  %v105_v35 = vsel %vm101_vm3, %v89_v50, %v104_v22 }
  0x97   :  { %v113_v59 = vsel %vm101_vm3, %v95_v52, %v112_v58  ;;  %v110_v61 = vsel %vm100_vm4, %v107_v54, %v109_v57  ;;  %v106_v30 = vsel %vm100_vm4, %v103_v34, %v105_v35 }
  0x98   :  { %v114_v63 = vsel %vm100_vm4, %v111_v56, %v113_v59  ;;  %v140_v1 = vand.u32 65535, %v110_v61  ;;  %v141_v2 = vshrl.u32 %v110_v61, 16  ;;  %v160_v44 = vmul.u32 %v943_v47, %v106_v30 }
  0x99   :  { %v118_v3 = vand.u32 65535, %v114_v63  ;;  %v119_v4 = vshrl.u32 %v114_v63, 16  ;;  %vm210_vm4 = vweird.f32 %v927_v10 }
  0x9a   :  { %v143_v5 = vmul.u32 %v141_v2, %v116_v60  ;;  %v144_v6 = vmul.u32 %v140_v1, %v117_v62  ;;  %v142_v9 = vmul.u32 %v140_v1, %v116_v60  ;;  %v145_v14 = vmul.u32 %v141_v2, %v117_v62  ;;  %v768_v1 = vld [vmem:[#allocation5 + $0x38] sm:$0xff] }
  0x9b   :  { %v121_v7 = vmul.u32 %v119_v4, %v116_v60  ;;  %v122_v8 = vmul.u32 %v118_v3, %v117_v62  ;;  %v120_v12 = vmul.u32 %v118_v3, %v116_v60  ;;  %v123_v15 = vmul.u32 %v119_v4, %v117_v62  ;;  %611 = vmatpush.bf16.msra.mxu2 %v768_v1 }
  0x9c   :  { %v146_v11 = vshll.u32 %v143_v5, 16  ;;  %v148_v16 = vshll.u32 %v144_v6, 16  ;;  %v147_v32 = vshrl.u32 %v143_v5, 16  ;;  %v149_v38 = vshrl.u32 %v144_v6, 16 }
  0x9d   :  { %v124_v13 = vshll.u32 %v121_v7, 16  ;;  %v126_v19 = vshll.u32 %v122_v8, 16  ;;  %v125_v36 = vshrl.u32 %v121_v7, 16  ;;  %v127_v40 = vshrl.u32 %v122_v8, 16 }
  0x9e   :  { %vm150_vm5 = vc.u32 %v142_v9, %v146_v11  ;;  %v152_v18 = vadd.s32 %v146_v11, %v142_v9 }
  0x9f   :  { %vm128_vm6 = vc.u32 %v120_v12, %v124_v13  ;;  %v130_v20 = vadd.s32 %v124_v13, %v120_v12  ;;  %v151_v21 = vsel %vm150_vm5, 1, %v871_v0 }
  0xa0   :  { %v129_v23 = vsel %vm128_vm6, 1, %v871_v0  ;;  %v153_v24 = vadd.s32 %v151_v21, %v145_v14  ;;  %vm154_vm7 = vc.u32 %v152_v18, %v148_v16 }
  0xa1   :  { %v131_v26 = vadd.s32 %v129_v23, %v123_v15  ;;  %vm132_vm8 = vc.u32 %v130_v20, %v126_v19  ;;  %v155_v27 = vsel %vm154_vm7, 1, %v871_v0 }
  0xa2   :  { %v133_v31 = vsel %vm132_vm8, 1, %v871_v0  ;;  %v157_v33 = vadd.s32 %v155_v27, %v153_v24  ;;  %v156_v0 = vadd.s32 %v152_v18, %v148_v16 }
  0xa3   :  { %v135_v37 = vadd.s32 %v133_v31, %v131_v26 }
  0xa4   :  { %v158_v39 = vadd.s32 %v157_v33, %v147_v32 }
  0xa5   :  { %v136_v29 = vadd.s32 %v135_v37, %v125_v36 }
  0xa6   :  { %v159_v41 = vadd.s32 %v158_v39, %v149_v38 }
  0xa7   :  { %v137_v42 = vadd.s32 %v136_v29, %v127_v40 }
  0xa8   :  { %v163_v43 = vadd.s32 1, %v159_v41 }
  0xa9   :  { %vm162_vm9 = vc.u32 %v137_v42, %v156_v0  ;;  %v161_v56 = vadd.s32 %v156_v0, %v137_v42  ;;  %v767_v42 = vld [vmem:[#allocation5 + $0x30] sm:$0xff]  ;;  %v766_v0 = vld [vmem:[#allocation5 + $0x28] sm:$0xff] }
  0xaa   :  { %v164_v45 = vsel %vm162_vm9, %v163_v43, %v159_v41  ;;  %612 = vmatpush.bf16.msra.mxu2 %v767_v42  ;;  %v765_v43 = vld [vmem:[#allocation5 + $0x20] sm:$0xff] }
  0xab   :  { %v165_v46 = vadd.s32 %v164_v45, %v160_v44  ;;  %v764_v44 = vld [vmem:[#allocation5 + $0x18] sm:$0xff]  ;;  %v763_v45 = vld [vmem:[#allocation5 + $0x10] sm:$0xff] }
  0xad   :  { %v166_v48 = vadd.s32 536870912, %v165_v46 }
  0xae   :  { %613 = vmatpush.bf16.msra.mxu2 %v766_v0 }
  0xaf   :  { %v167_v49 = vshrl.u32 %v166_v48, 30  ;;  %v783_v48 = vld [vmem:[%s999_s3] ss:$0 sm:$0xff]  ;;  %s878_s3 = smov [#allocation7]  }
  0xb0   :  { %s630_s13 = sshll.u32 %s878_s3, 4  ;;  %s631_s13 = int_to_ptr.vmem [resolvable:$true] %s630_s13 }
  0xb1   :  { %v168_v50 = vshll.u32 %v167_v49, 30  ;;  %v191_v7 = vsub.s32 4, %v167_v49 }
  0xb2   :  { %614 = vmatpush.bf16.msra.mxu2 %v765_v43 }
  0xb3   :  { %v169_v51 = vsub.s32 %v165_v46, %v168_v50  ;;  %v192_v13 = vsel %vm69_vm12, %v191_v7, %v167_v49  ;;  %v762_v46 = vld [vmem:[#allocation5 + $0x8] sm:$0xff] }
  0xb4   :  { %v194_v16 = vsel %vm68_vm13, 0, %v192_v13 }
  0xb5   :  { %vm170_vm10 = vcmp.lt.s32.totalorder %v169_v51, 0  ;;  %v171_v52 = vsub.s32 0, %v169_v51  ;;  %v365_v22 = vadd.s32 3, %v194_v16  ;;  %v211_v26 = vand.u32 3, %v194_v16 }
  0xb6   :  { %615 = vmatpush.bf16.msra.mxu2 %v764_v44 }
  0xb7   :  { %v172_v53 = vsel %vm170_vm10, %v171_v52, %v169_v51  ;;  %v366_v27 = vand.u32 3, %v365_v22  ;;  %vm212_vm14 = vcmp.lt.s32.totalorder %v211_v26, 2  ;;  %vm213_vm15 = vcmp.eq.s32.totalorder %v211_v26, 0 }
  0xb8   :  { %v173_v54 = vclz %v172_v53  ;;  %vm216_vm0 = vcmp.eq.s32.totalorder %v211_v26, 2 }
  0xb9   :  { %vm367_vm1 = vcmp.lt.s32.totalorder %v366_v27, 2  ;;  %vm368_vm2 = vcmp.eq.s32.totalorder %v366_v27, 0  ;;  %vm371_vm3 = vcmp.eq.s32.totalorder %v366_v27, 2 }
  0xba   :  { %v644_v55 = vadd.s32 4294967294, %v173_v54  ;;  %616 = vmatpush.bf16.msra.mxu2 %v763_v45 }
  0xbc   :  { %vm645_vm11 = vcmp.lt.s32.totalorder %v644_v55, 0 }
  0xbd   :  { %v176_v28 = vsel %vm645_vm11, 0, %v644_v55 }
  0xbe   :  { %v177_v57 = vsub.s32 32, %v176_v28  ;;  %v181_v58 = vsub.s32 4294967266, %v176_v28  ;;  %v178_v59 = vshll.u32 %v169_v51, %v176_v28  ;;  %617 = vmatpush.bf16.msra.mxu2 %v762_v46 }
  0xc0   :  { %v179_v60 = vshrl.u32 %v161_v56, %v177_v57  ;;  %v182_v47 = vadd.s32 127, %v181_v58 }
  0xc2   :  { %v180_v61 = vor.u32 %v179_v60, %v178_v59  ;;  %v183_v62 = vshll.u32 %v182_v47, 23  ;;  %v784_v47 = vld [vmem:[%s1001_s5] ss:$0 sm:$0xff] }
  0xc4   :  { %v184_v63 = vor.u32 4788187, %v183_v62  ;;  %v187_v3 = vcvt.s32.f32 %v180_v61 }
  0xc6   :  { %v185_v2 = vand.u32 2147483647, %v184_v63 }
  0xc8   :  { %v188_v4 = vmul.f32 %v187_v3, %v185_v2 }
  0xca   :  { %v189_v5 = vxor.u32 2147483648, %v188_v4 }
  0xcc   :  { %v190_v6 = vsel %vm69_vm12, %v189_v5, %v188_v4 }
  0xcd   :  { %v193_v8 = vsel %vm68_vm13, %v927_v10, %v190_v6  ;;  %v761_v10 = vld [vmem:[#allocation5] sm:$0xff] }
  0xce   :  { %v195_v9 = vmul.f32 %v193_v8, %v193_v8  ;;  %618 = vmatpush.bf16.msra.mxu2 %v761_v10 }
  0xd0   :  { %v196_v11 = vmul.f32 -0.001358992, %v195_v9  ;;  %v203_v12 = vmul.f32 -0.00019511016, %v195_v9 }
  0xd2   :  { %v197_v14 = vadd.f32 0.041655596, %v196_v11  ;;  %v204_v15 = vadd.f32 0.008332121, %v203_v12 }
  0xd4   :  { %v198_v18 = vmul.f32 %v197_v14, %v195_v9  ;;  %v205_v19 = vmul.f32 %v204_v15, %v195_v9 }
  0xd6   :  { %v199_v20 = vadd.f32 -0.4999988, %v198_v18  ;;  %v206_v21 = vadd.f32 -0.16666654, %v205_v19 }
  0xd8   :  { %v200_v23 = vmul.f32 %v199_v20, %v195_v9  ;;  %v207_v24 = vmul.f32 %v206_v21, %v195_v9 }
  0xda   :  { %v201_v25 = vadd.f32 1.0, %v200_v23  ;;  %v208_v17 = vadd.f32 1.0, %v207_v24 }
  0xdc   :  { %v209_v31 = vmul.f32 %v208_v17, %v193_v8  ;;  %v217_v32 = vxor.u32 2147483648, %v201_v25 }
  0xde   :  { %v214_v33 = vxor.u32 2147483648, %v209_v31  ;;  %v218_v35 = vsel %vm216_vm0, %v217_v32, %v209_v31  ;;  %v373_v37 = vsel %vm371_vm3, %v217_v32, %v209_v31 }
  0xe0   :  { %v215_v34 = vsel %vm213_vm15, %v201_v25, %v214_v33  ;;  %v370_v36 = vsel %vm368_vm2, %v201_v25, %v214_v33 }
  0xe1   :  { %v219_v38 = vsel %vm212_vm14, %v215_v34, %v218_v35  ;;  %v374_v39 = vsel %vm367_vm1, %v370_v36, %v373_v37 }
  0xe2   :  { %v220_v40 = vsel %vm210_vm4, nan, %v219_v38  ;;  %v375_v29 = vsel %vm210_vm4, nan, %v374_v39 }
  0xe3   :  { %v376_v30 = vpack.c.bf16 %v220_v40, %v220_v40  ;;  %v377_v41 = vpack.c.bf16 %v375_v29, %v375_v29 }
  0xe5   :  { %518 = vmatmul.bf16.vlgmr.msra.gmra.mxu0 %v376_v30  ;;  %531 = vmatmul.bf16.vlgmr.msra.gmra.mxu1 %v377_v41 }
 0x162   :  { %v519_v49 = vpop.f32.mrf.mxu0  ;;  %v532_v50 = vpop.f32.mrf.mxu1 }
 0x163   :  { %v520_v51 = vadd.f32 %v783_v48, %v519_v49 }
 0x165   :  { %v533_v52 = vadd.f32 %v532_v50, %v520_v51 }
 0x167   :  { %v536_v53 = vsub.f32 0.0, %v533_v52 }
 0x169   :  { %v537_v54 = vmul.f32 1.442695, %v536_v53 }
 0x16a   :  { %v521_v55 = vpop.f32.mrf.mxu0  ;;  %v534_v28 = vpop.f32.mrf.mxu1 }
 0x16b   :  { %785 = vpow2.f32 %v537_v54 }
 0x171   :  { %v786_v56 = vpop.eup %785 }
 0x172   :  { %v539_v57 = vadd.f32 1.0, %v786_v56 }
 0x174   :  { %787 = vrcp.f32 %v539_v57 }
 0x17a   :  { %v788_v58 = vpop.eup %787 }
 0x17b   :  { %v541_v59 = vmul.f32 %v788_v58, %v533_v52 }
 0x17d   :  { %v542_v60 = vpack.c.bf16 %v541_v59, %v541_v59 }
 0x17f   :  { %619 = vmatmul.bf16.vlgmr.msra.gmra.mxu2 %v542_v60 }
 0x202   :  { %v620_v61 = vpop.f32.mrf.mxu2 }
 0x203   :  { %v621_v62 = vadd.f32 %v784_v47, %v620_v61 }
 0x205   :  { %624 = vst [vmem:[#allocation7] sm:$0xff] %v621_v62 }
 0x206   :  { %635 = dma.vmem_to_hbm [thread:$0]  %s631_s13, 128, %s633_s16, [#allocation4]  }
 0x20a   :  { %v622_v63 = vpop.f32.mrf.mxu2 }
 0x20b   :  { %865 = dma.done.wait [#allocation4], 128  }
 0x20c   :  { %866 = vsyncadd [#allocation4], 4294967168 }
 0x20d   :  { %640 = vsyncpa [#allocation3], 1 }
 0x20e   :  { %641 = vsyncpa [#allocation6], 1 }
 0x20f   :  { %642 = vsyncpa [#allocation4], 1 }

</bundles_post_ra>
